<compile_context>
chip_gen: v5e
topology: v5e:2x2
jax: 0.10.0
libtpu: 0.0.40
codegen_flags: <defaults>
</compile_context>

<pallas_src>
import math

import jax
import jax.numpy as jnp
from jax.experimental import pallas as pl
from jax.experimental.pallas import tpu as pltpu

_LANE = 128
_CHUNK_ROWS = 256                        # sub-chunk rows for in-block accumulation
_MAX_BLOCK_BYTES = 2 * 1024 * 1024       # per-input block target (2 MiB)
_VMEM_INPUT_BUDGET = 20 * 1024 * 1024    # all inputs x 2 buffers must fit here
_VMEM_LIMIT_BYTES = 32 * 1024 * 1024     # explicit raise above v5e's 16 MiB default


def _round_up(x, m):
    return ((x + m - 1) // m) * m


def _detect_num_cores():
    """2 TensorCores per chip on v7x; 1 on v5e/v6e (and anything unknown)."""
    try:
        kind = jax.devices()[0].device_kind.lower()
    except Exception:
        return 1
    return 2 if ("v7" in kind or "tpu7" in kind or "7x" in kind) else 1


def _sublane(dtype):
    # second-minor tile multiple per dtype packing: f32 -> 8, bf16 -> 16, int8 -> 32
    return max(8, 32 // jnp.dtype(dtype).itemsize)


def _pick_block_rows(rows, block_bytes, *dtypes):
    """Block rows: big (up to block_bytes) and a multiple of _CHUNK_ROWS when chunked."""
    sub = max(_sublane(d) for d in dtypes)
    if rows <= _CHUNK_ROWS:
        return _round_up(rows, sub)
    itemsize = max(jnp.dtype(d).itemsize for d in dtypes)
    max_rows = max(_CHUNK_ROWS,
                   (block_bytes // (_LANE * itemsize)) // _CHUNK_ROWS * _CHUNK_ROWS)
    return min(max_rows, _round_up(rows, _CHUNK_ROWS))


def _split_slab(x):
    """Flatten to a lane-dense (rows, 128) slab plus a <128-element JAX tail.

    The reshape is a free bitcast when x.size % 128 == 0 (the common case).
    """
    flat = x.reshape(-1)
    n = flat.shape[0]
    rows = n // _LANE
    if n % _LANE == 0:
        slab = flat.reshape(rows, _LANE) if rows else None
        tail = None
    else:
        main = rows * _LANE
        # TODO(synk): XLA may materialize this prefix slice for misaligned
        # tensors; still no worse than the previous full-tensor jnp.pad copy.
        slab = flat[:main].reshape(rows, _LANE) if rows else None
        tail = flat[main:]
    return slab, rows, tail


# ---------------------------------------------------------------------------
# in-kernel helpers
# ---------------------------------------------------------------------------
def _block_partial_sums(br, read_chunk, valid_rows=None):
    """Reduce one (br, 128) block to an (8, 128) f32 per-vreg partial sum.

    read_chunk(r0, nrows) -> (nrows, 128) f32 values of rows [r0, r0+nrows).
    valid_rows (static int): rows >= valid_rows are dropped with a lane select
    (never a multiply: garbage rows of a partial edge block may hold inf/nan).
    """
    def one_chunk(r0, nrows):
        v = read_chunk(r0, nrows)
        if valid_rows is not None:
            row = r0 + jax.lax.broadcasted_iota(jnp.int32, (nrows, _LANE), 0)
            v = jnp.where(row < valid_rows, v, 0.0)
        # per-vreg partial sums: pure VPU adds across vregs, no cross-lane work
        return jnp.sum(v.reshape(nrows // 8, 8, _LANE), axis=0)

    if br <= _CHUNK_ROWS:
        return one_chunk(0, br)

    nchunks = br // _CHUNK_ROWS          # br is a multiple of _CHUNK_ROWS here

    def body(k, acc):
        r0 = pl.multiple_of(k * _CHUNK_ROWS, _CHUNK_ROWS)
        return acc + one_chunk(r0, _CHUNK_ROWS)

    return jax.lax.fori_loop(0, nchunks, body,
                             jnp.zeros((8, _LANE), jnp.float32), unroll=4)


def _accumulate_phase(g, o_ref, start, nblk, br, rows, read_chunk):
    """Accumulate this phase's contribution for global block index g."""
    last = start + nblk - 1
    last_valid = rows - (nblk - 1) * br          # static valid rows in last block

    if last_valid == br:
        # fully aligned: one unmasked branch covers every block of this phase
        @pl.when((g >= start) & (g <= last))
        def _():
            o_ref[...] += _block_partial_sums(br, read_chunk)[None]
        return

    if nblk > 1:
        @pl.when((g >= start) & (g < last))      # unmasked hot path
        def _():
            o_ref[...] += _block_partial_sums(br, read_chunk)[None]

    @pl.when(g == last)                          # masked only on the last block
    def _():
        o_ref[...] += _block_partial_sums(br, read_chunk,
                                          valid_rows=last_valid)[None]


# ---------------------------------------------------------------------------
# fused reduction: sum(log(lik_t)) for all t  AND  sum((x_hat - target)^2)
# ---------------------------------------------------------------------------
def _rd_reductions(likelihoods, x_hat, target):
    ncores = _detect_num_cores()

    log_tail = 0.0
    sse_tail = 0.0

    log_slabs = []                               # (slab, rows)
    for x in likelihoods:
        slab, rows, tail = _split_slab(x)
        if tail is not None:
            log_tail = log_tail + jnp.sum(jnp.log(tail.astype(jnp.float32)))
        if rows:
            log_slabs.append((slab, rows))

    xh_slab, xh_rows, xh_tail = _split_slab(x_hat)
    tg_slab, tg_rows, tg_tail = _split_slab(target)
    assert xh_rows == tg_rows, "x_hat and target must have the same element count"
    if xh_tail is not None:
        d = xh_tail.astype(jnp.float32) - tg_tail.astype(jnp.float32)
        sse_tail = sse_tail + jnp.sum(d * d)

    n_inputs = len(log_slabs) + (2 if xh_rows else 0)
    if n_inputs == 0:                            # everything is < 128 elements
        return (jnp.asarray(log_tail, jnp.float32),
                jnp.asarray(sse_tail, jnp.float32))

    block_bytes = max(256 * 1024,
                      min(_MAX_BLOCK_BYTES, _VMEM_INPUT_BUDGET // (2 * n_inputs)))

    operands, in_block_shapes, in_phase_meta = [], [], []
    phases = []                                  # kind, op, start, nblk, br, rows
    start = 0
    for slab, rows in log_slabs:
        br = _pick_block_rows(rows, block_bytes, slab.dtype)
        nblk = pl.cdiv(rows, br)
        phases.append(dict(kind="log", op=len(operands), start=start,
                           nblk=nblk, br=br, rows=rows))
        operands.append(slab)
        in_block_shapes.append((br, _LANE))
        in_phase_meta.append((start, nblk))
        start += nblk

    if xh_rows:
        br = _pick_block_rows(xh_rows, block_bytes, xh_slab.dtype, tg_slab.dtype)
        nblk = pl.cdiv(xh_rows, br)
        phases.append(dict(kind="sse", op=len(operands), start=start,
                           nblk=nblk, br=br, rows=xh_rows))
        for s in (xh_slab, tg_slab):
            operands.append(s)
            in_block_shapes.append((br, _LANE))
            in_phase_meta.append((start, nblk))
        start += nblk

    total_blocks = start
    per_core = pl.cdiv(total_blocks, ncores)
    n_operands = len(operands)

    def kernel(*refs):
        in_refs = refs[:n_operands]
        log_ref = refs[n_operands]               # (1, 8, 128) resident accumulator
        sse_ref = refs[n_operands + 1]           # (1, 8, 128) resident accumulator
        c = pl.program_id(0)
        i = pl.program_id(1)
        g = c * per_core + i                     # global block index

        @pl.when(i == 0)
        def _():
            log_ref[...] = jnp.zeros_like(log_ref)
            sse_ref[...] = jnp.zeros_like(sse_ref)

        for ph in phases:
            if ph["kind"] == "log":
                ref = in_refs[ph["op"]]

                def rd(r0, nrows, ref=ref):      # cast + log on-chip
                    return jnp.log(ref[pl.ds(r0, nrows), :].astype(jnp.float32))

                _accumulate_phase(g, log_ref, ph["start"], ph["nblk"],
                                  ph["br"], ph["rows"], rd)
            else:
                a_ref = in_refs[ph["op"]]
                b_ref = in_refs[ph["op"] + 1]

                def rd(r0, nrows, a_ref=a_ref, b_ref=b_ref):
                    d = (a_ref[pl.ds(r0, nrows), :].astype(jnp.float32)
                         - b_ref[pl.ds(r0, nrows), :].astype(jnp.float32))
                    return d * d

                _accumulate_phase(g, sse_ref, ph["start"], ph["nblk"],
                                  ph["br"], ph["rows"], rd)

    def make_in_map(s, nb):
        def in_map(c, i):
            g = c * per_core + i
            # clamp outside this tensor's phase -> block index unchanged -> no re-DMA
            return (jnp.clip(g - s, 0, nb - 1), 0)
        return in_map

    in_specs = [pl.BlockSpec(shape, make_in_map(s, nb))
                for shape, (s, nb) in zip(in_block_shapes, in_phase_meta)]
    acc_spec = pl.BlockSpec((1, 8, _LANE), lambda c, i: (c, 0, 0))

    core_sem = pltpu.CORE_PARALLEL if ncores > 1 else pltpu.ARBITRARY

    log_elems = sum(p["rows"] * _LANE for p in phases if p["kind"] == "log")
    sse_elems = sum(p["rows"] * _LANE for p in phases if p["kind"] == "sse")
    bytes_in = sum(int(op.size) * op.dtype.itemsize for op in operands)
    cost = pl.CostEstimate(flops=3 * sse_elems + log_elems,
                           transcendentals=log_elems,
                           bytes_accessed=bytes_in + 2 * ncores * 8 * _LANE * 4)

    log_out, sse_out = pl.pallas_call(
        kernel,
        out_shape=(jax.ShapeDtypeStruct((ncores, 8, _LANE), jnp.float32),
                   jax.ShapeDtypeStruct((ncores, 8, _LANE), jnp.float32)),
        grid_spec=pltpu.PrefetchScalarGridSpec(
            num_scalar_prefetch=0,
            grid=(ncores, per_core),
            in_specs=in_specs,
            out_specs=(acc_spec, acc_spec),
        ),
        compiler_params=pltpu.CompilerParams(
            dimension_semantics=(core_sem, pltpu.ARBITRARY),
            vmem_limit_bytes=_VMEM_LIMIT_BYTES),
        cost_estimate=cost,
    )(*operands)

    log_sum = jnp.sum(log_out) + log_tail        # tiny final reductions in JAX
    sse = jnp.sum(sse_out) + sse_tail
    return log_sum, sse


# ---------------------------------------------------------------------------
# RateDistortionLoss forward
# ---------------------------------------------------------------------------
def rate_distortion_loss(output, target, lmbda=0.01):
    """output = {'x_hat': (N,C,H,W), 'likelihoods': {name: array}}, target NCHW."""
    N, _, H, W = target.shape
    num_pixels = N * H * W

    likelihoods = list(output['likelihoods'].values())
    log_sum, sse = _rd_reductions(likelihoods, output['x_hat'], target)

    if likelihoods:
        bpp_loss = log_sum / (-math.log(2) * num_pixels)
    else:
        bpp_loss = jnp.float32(0.0)
    mse_loss = sse / jnp.float32(target.size)    # nn.MSELoss() default: mean
    loss = lmbda * (255.0 ** 2) * mse_loss + bpp_loss
    return {'bpp_loss': bpp_loss, 'mse_loss': mse_loss, 'loss': loss}


# ---------------------------------------------------------------------------
# Demo / self-check
# ---------------------------------------------------------------------------
if __name__ == "__main__":

    def reference(output, target, lmbda=0.01):
        N, _, H, W = target.shape
        num_pixels = N * H * W
        bpp = sum(jnp.sum(jnp.log(l.astype(jnp.float32)))
                  for l in output['likelihoods'].values()) / (-math.log(2) * num_pixels)
        mse = jnp.mean((output['x_hat'].astype(jnp.float32)
                        - target.astype(jnp.float32)) ** 2)
        return bpp, mse, lmbda * (255.0 ** 2) * mse + bpp

    loss_fn = jax.jit(rate_distortion_loss)

    def run_case(key, xhat_shape, lik_shapes):
        ks = jax.random.split(key, 2 + len(lik_shapes))
        target = jax.random.normal(ks[0], xhat_shape, dtype=jnp.float32)
        x_hat = target + 0.1 * jax.random.normal(ks[1], xhat_shape, dtype=jnp.float32)
        liks = {name: jax.random.uniform(k, shp, dtype=jnp.float32,
                                         minval=0.01, maxval=1.0)
                for (name, shp), k in zip(lik_shapes.items(), list(ks[2:]))}
        output = {'x_hat': x_hat, 'likelihoods': liks}

        out = loss_fn(output, target)
        out = jax.tree_util.tree_map(jax.block_until_ready, out)

        ref_bpp, ref_mse, ref_loss = reference(output, target)
        assert jnp.allclose(out['bpp_loss'], ref_bpp, rtol=1e-4, atol=1e-5), \
            (out['bpp_loss'], ref_bpp)
        assert jnp.allclose(out['mse_loss'], ref_mse, rtol=1e-5, atol=1e-6), \
            (out['mse_loss'], ref_mse)
        assert jnp.allclose(out['loss'], ref_loss, rtol=1e-4, atol=1e-5), \
            (out['loss'], ref_loss)

    key = jax.random.PRNGKey(0)
    k1, k2 = jax.random.split(key)

    # primary small case (batch=2, channels=4, spatial=16) -- everything aligned
    run_case(k1, (2, 4, 16, 16), {'y': (2, 8, 8, 8), 'z': (2, 4, 4, 4)})

    # coverage case: exercises the chunked fori path (unmasked + masked),
    # a multi-block phase, a partial last block and a <128-element JAX tail.
    run_case(k2, (2, 16, 64, 32),
             {'y': (2, 48, 80, 80), 'z': (2, 10, 62, 62), 'w': (2, 4, 4, 4)})

    print("KERNEL_OK")
</pallas_src>

<mosaic_0001>
module attributes {stable_mosaic.version = 11 : i64} {
  func.func @kernel(%arg0: i32, %arg1: i32, %arg2: memref<8x128xf32, #tpu.memory_space<vmem>>, %arg3: memref<8x128xf32, #tpu.memory_space<vmem>>, %arg4: memref<16x128xf32, #tpu.memory_space<vmem>>, %arg5: memref<16x128xf32, #tpu.memory_space<vmem>>, %arg6: memref<1x8x128xf32, #tpu.memory_space<vmem>>, %arg7: memref<1x8x128xf32, #tpu.memory_space<vmem>>) attributes {dimension_semantics = [#tpu.dimension_semantics<arbitrary>, #tpu.dimension_semantics<arbitrary>], iteration_bounds = array<i64: 1, 3>, scalar_prefetch = 0 : i64, scratch_operands = 0 : i64, tpu.core_type = #tpu.core_type<tc>, window_params = [{transform_indices = @transform_0, window_bounds = array<i64: 8, 128>}, {transform_indices = @transform_1, window_bounds = array<i64: 8, 128>}, {transform_indices = @transform_2, window_bounds = array<i64: 16, 128>}, {transform_indices = @transform_3, window_bounds = array<i64: 16, 128>}, {transform_indices = @transform_4, window_bounds = array<i64: 1, 8, 128>}, {transform_indices = @transform_5, window_bounds = array<i64: 1, 8, 128>}]} {
    %c3_i32 = arith.constant 3 : i32
    %0 = arith.muli %arg0, %c3_i32 : i32
    %1 = arith.addi %0, %arg1 : i32
    %c0_i32 = arith.constant 0 : i32
    %2 = arith.cmpi eq, %arg1, %c0_i32 : i32
    %3 = arith.extui %2 : i1 to i32
    %c0_i32_0 = arith.constant 0 : i32
    %4 = arith.cmpi ne, %3, %c0_i32_0 : i32
    scf.if %4 {
      %cst = arith.constant 0.000000e+00 : f32
      %18 = vector.broadcast %cst : f32 to vector<1x8x128xf32>
      %c0 = arith.constant 0 : index
      %c0_7 = arith.constant 0 : index
      %c0_8 = arith.constant 0 : index
      %19 = vector.load %arg6[%c0, %c0_7, %c0_8] : memref<1x8x128xf32, #tpu.memory_space<vmem>>, vector<1x8x128xf32>
      tpu.vector_store %arg6[%c0, %c0_7, %c0_8], %18 {strides = array<i32>} : memref<1x8x128xf32, #tpu.memory_space<vmem>>, vector<1x8x128xf32>,
      %cst_9 = arith.constant 0.000000e+00 : f32
      %20 = vector.broadcast %cst_9 : f32 to vector<1x8x128xf32>
      %c0_10 = arith.constant 0 : index
      %c0_11 = arith.constant 0 : index
      %c0_12 = arith.constant 0 : index
      %21 = vector.load %arg7[%c0_10, %c0_11, %c0_12] : memref<1x8x128xf32, #tpu.memory_space<vmem>>, vector<1x8x128xf32>
      tpu.vector_store %arg7[%c0_10, %c0_11, %c0_12], %20 {strides = array<i32>} : memref<1x8x128xf32, #tpu.memory_space<vmem>>, vector<1x8x128xf32>,
    } else {
    }
    %c0_i32_1 = arith.constant 0 : i32
    %5 = arith.cmpi sge, %1, %c0_i32_1 : i32
    %c0_i32_2 = arith.constant 0 : i32
    %6 = arith.cmpi sle, %1, %c0_i32_2 : i32
    %7 = arith.andi %5, %6 : i1
    %8 = arith.extui %7 : i1 to i32
    %c0_i32_3 = arith.constant 0 : i32
    %9 = arith.cmpi ne, %8, %c0_i32_3 : i32
    scf.if %9 {
      %c0 = arith.constant 0 : index
      %c0_7 = arith.constant 0 : index
      %c0_8 = arith.constant 0 : index
      %18 = vector.load %arg6[%c0, %c0_7, %c0_8] : memref<1x8x128xf32, #tpu.memory_space<vmem>>, vector<1x8x128xf32>
      %c0_9 = arith.constant 0 : index
      %c0_10 = arith.constant 0 : index
      %19 = vector.load %arg2[%c0_9, %c0_10] : memref<8x128xf32, #tpu.memory_space<vmem>>, vector<8x128xf32>
      %20 = math.log %19 : vector<8x128xf32>
      %21 = vector.shape_cast %20 : vector<8x128xf32> to vector<1x8x128xf32>
      %cst = arith.constant dense<0.000000e+00> : vector<8x128xf32>
      %22 = vector.multi_reduction <add>, %21, %cst [0] : vector<1x8x128xf32> to vector<8x128xf32>
      %23 = vector.shape_cast %22 : vector<8x128xf32> to vector<1x8x128xf32>
      %24 = arith.addf %18, %23 : vector<1x8x128xf32>
      %c0_11 = arith.constant 0 : index
      %c0_12 = arith.constant 0 : index
      %c0_13 = arith.constant 0 : index
      %25 = vector.load %arg6[%c0_11, %c0_12, %c0_13] : memref<1x8x128xf32, #tpu.memory_space<vmem>>, vector<1x8x128xf32>
      tpu.vector_store %arg6[%c0_11, %c0_12, %c0_13], %24 {strides = array<i32>} : memref<1x8x128xf32, #tpu.memory_space<vmem>>, vector<1x8x128xf32>,
    } else {
    }
    %c1_i32 = arith.constant 1 : i32
    %10 = arith.cmpi eq, %1, %c1_i32 : i32
    %11 = arith.extui %10 : i1 to i32
    %c0_i32_4 = arith.constant 0 : i32
    %12 = arith.cmpi ne, %11, %c0_i32_4 : i32
    scf.if %12 {
      %c0 = arith.constant 0 : index
      %c0_7 = arith.constant 0 : index
      %c0_8 = arith.constant 0 : index
      %18 = vector.load %arg6[%c0, %c0_7, %c0_8] : memref<1x8x128xf32, #tpu.memory_space<vmem>>, vector<1x8x128xf32>
      %c0_9 = arith.constant 0 : index
      %c0_10 = arith.constant 0 : index
      %19 = vector.load %arg3[%c0_9, %c0_10] : memref<8x128xf32, #tpu.memory_space<vmem>>, vector<8x128xf32>
      %20 = math.log %19 : vector<8x128xf32>
      %21 = tpu.iota {dimensions = array<i32: 0>} : vector<8x128xi32>
      %c0_i32_11 = arith.constant 0 : i32
      %22 = vector.broadcast %c0_i32_11 : i32 to vector<8x128xi32>
      %23 = arith.addi %22, %21 : vector<8x128xi32>
      %c1_i32_12 = arith.constant 1 : i32
      %24 = vector.broadcast %c1_i32_12 : i32 to vector<8x128xi32>
      %25 = arith.cmpi slt, %23, %24 : vector<8x128xi32>
      %cst = arith.constant 0.000000e+00 : f32
      %26 = vector.broadcast %cst : f32 to vector<8x128xf32>
      %27 = arith.select %25, %20, %26 : vector<8x128xi1>, vector<8x128xf32>
      %28 = vector.shape_cast %27 : vector<8x128xf32> to vector<1x8x128xf32>
      %cst_13 = arith.constant dense<0.000000e+00> : vector<8x128xf32>
      %29 = vector.multi_reduction <add>, %28, %cst_13 [0] : vector<1x8x128xf32> to vector<8x128xf32>
      %30 = vector.shape_cast %29 : vector<8x128xf32> to vector<1x8x128xf32>
      %31 = arith.addf %18, %30 : vector<1x8x128xf32>
      %c0_14 = arith.constant 0 : index
      %c0_15 = arith.constant 0 : index
      %c0_16 = arith.constant 0 : index
      %32 = vector.load %arg6[%c0_14, %c0_15, %c0_16] : memref<1x8x128xf32, #tpu.memory_space<vmem>>, vector<1x8x128xf32>
      tpu.vector_store %arg6[%c0_14, %c0_15, %c0_16], %31 {strides = array<i32>} : memref<1x8x128xf32, #tpu.memory_space<vmem>>, vector<1x8x128xf32>,
    } else {
    }
    %c2_i32 = arith.constant 2 : i32
    %13 = arith.cmpi sge, %1, %c2_i32 : i32
    %c2_i32_5 = arith.constant 2 : i32
    %14 = arith.cmpi sle, %1, %c2_i32_5 : i32
    %15 = arith.andi %13, %14 : i1
    %16 = arith.extui %15 : i1 to i32
    %c0_i32_6 = arith.constant 0 : i32
    %17 = arith.cmpi ne, %16, %c0_i32_6 : i32
    scf.if %17 {
      %c0 = arith.constant 0 : index
      %c0_7 = arith.constant 0 : index
      %c0_8 = arith.constant 0 : index
      %18 = vector.load %arg7[%c0, %c0_7, %c0_8] : memref<1x8x128xf32, #tpu.memory_space<vmem>>, vector<1x8x128xf32>
      %c0_9 = arith.constant 0 : index
      %c0_10 = arith.constant 0 : index
      %19 = vector.load %arg4[%c0_9, %c0_10] : memref<16x128xf32, #tpu.memory_space<vmem>>, vector<16x128xf32>
      %c0_11 = arith.constant 0 : index
      %c0_12 = arith.constant 0 : index
      %20 = vector.load %arg5[%c0_11, %c0_12] : memref<16x128xf32, #tpu.memory_space<vmem>>, vector<16x128xf32>
      %21 = arith.subf %19, %20 : vector<16x128xf32>
      %22 = arith.mulf %21, %21 : vector<16x128xf32>
      %23 = vector.shape_cast %22 : vector<16x128xf32> to vector<2x8x128xf32>
      %cst = arith.constant dense<0.000000e+00> : vector<8x128xf32>
      %24 = vector.multi_reduction <add>, %23, %cst [0] : vector<2x8x128xf32> to vector<8x128xf32>
      %25 = vector.shape_cast %24 : vector<8x128xf32> to vector<1x8x128xf32>
      %26 = arith.addf %18, %25 : vector<1x8x128xf32>
      %c0_13 = arith.constant 0 : index
      %c0_14 = arith.constant 0 : index
      %c0_15 = arith.constant 0 : index
      %27 = vector.load %arg7[%c0_13, %c0_14, %c0_15] : memref<1x8x128xf32, #tpu.memory_space<vmem>>, vector<1x8x128xf32>
      tpu.vector_store %arg7[%c0_13, %c0_14, %c0_15], %26 {strides = array<i32>} : memref<1x8x128xf32, #tpu.memory_space<vmem>>, vector<1x8x128xf32>,
    } else {
    }
    return
  }
  func.func @transform_0(%arg0: i32, %arg1: i32) -> (i32, i32) {
    %c3_i32 = arith.constant 3 : i32
    %0 = arith.muli %arg0, %c3_i32 : i32
    %1 = arith.addi %0, %arg1 : i32
    %c0_i32 = arith.constant 0 : i32
    %2 = arith.subi %1, %c0_i32 : i32
    %c0_i32_0 = arith.constant 0 : i32
    %c0_i32_1 = arith.constant 0 : i32
    %3 = arith.maxsi %c0_i32_0, %2 : i32
    %4 = arith.minsi %c0_i32_1, %3 : i32
    %c0_i32_2 = arith.constant 0 : i32
    %c0_i32_3 = arith.constant 0 : i32
    return %4, %c0_i32_2 : i32, i32
  }
  func.func @transform_1(%arg0: i32, %arg1: i32) -> (i32, i32) {
    %c3_i32 = arith.constant 3 : i32
    %0 = arith.muli %arg0, %c3_i32 : i32
    %1 = arith.addi %0, %arg1 : i32
    %c1_i32 = arith.constant 1 : i32
    %2 = arith.subi %1, %c1_i32 : i32
    %c0_i32 = arith.constant 0 : i32
    %c0_i32_0 = arith.constant 0 : i32
    %3 = arith.maxsi %c0_i32, %2 : i32
    %4 = arith.minsi %c0_i32_0, %3 : i32
    %c0_i32_1 = arith.constant 0 : i32
    %c0_i32_2 = arith.constant 0 : i32
    return %4, %c0_i32_1 : i32, i32
  }
  func.func @transform_2(%arg0: i32, %arg1: i32) -> (i32, i32) {
    %c3_i32 = arith.constant 3 : i32
    %0 = arith.muli %arg0, %c3_i32 : i32
    %1 = arith.addi %0, %arg1 : i32
    %c2_i32 = arith.constant 2 : i32
    %2 = arith.subi %1, %c2_i32 : i32
    %c0_i32 = arith.constant 0 : i32
    %c0_i32_0 = arith.constant 0 : i32
    %3 = arith.maxsi %c0_i32, %2 : i32
    %4 = arith.minsi %c0_i32_0, %3 : i32
    %c0_i32_1 = arith.constant 0 : i32
    %c0_i32_2 = arith.constant 0 : i32
    return %4, %c0_i32_1 : i32, i32
  }
  func.func @transform_3(%arg0: i32, %arg1: i32) -> (i32, i32) {
    %c3_i32 = arith.constant 3 : i32
    %0 = arith.muli %arg0, %c3_i32 : i32
    %1 = arith.addi %0, %arg1 : i32
    %c2_i32 = arith.constant 2 : i32
    %2 = arith.subi %1, %c2_i32 : i32
    %c0_i32 = arith.constant 0 : i32
    %c0_i32_0 = arith.constant 0 : i32
    %3 = arith.maxsi %c0_i32, %2 : i32
    %4 = arith.minsi %c0_i32_0, %3 : i32
    %c0_i32_1 = arith.constant 0 : i32
    %c0_i32_2 = arith.constant 0 : i32
    return %4, %c0_i32_1 : i32, i32
  }
  func.func @transform_4(%arg0: i32, %arg1: i32) -> (i32, i32, i32) {
    %c0_i32 = arith.constant 0 : i32
    %c0_i32_0 = arith.constant 0 : i32
    %c0_i32_1 = arith.constant 0 : i32
    return %arg0, %c0_i32, %c0_i32_0 : i32, i32, i32
  }
  func.func @transform_5(%arg0: i32, %arg1: i32) -> (i32, i32, i32) {
    %c0_i32 = arith.constant 0 : i32
    %c0_i32_0 = arith.constant 0 : i32
    %c0_i32_1 = arith.constant 0 : i32
    return %arg0, %c0_i32, %c0_i32_0 : i32, i32, i32
  }
}

</mosaic_0001>

<bundles_post_ra>
// kernel: rate_distortion_loss.1
= control target key start
LH: loop header
LB: loop body
LE: loop exit
PB: predicated region body
PF: predicated region fallthrough
CT: control target
= control target key end

     0   :  { %s843_s18 = smov 0   ;;  %s845_s19 = smov 0   ;;  %s920_s0 = inlined_call_operand.vmem [shape: f32[8,128], index: 0, kind: input, shape index: {}]   ;;  %s921_s1 = inlined_call_operand.vmem [shape: f32[1,128], index: 1, kind: input, shape index: {}]   ;;  %s922_s2 = inlined_call_operand.vmem [shape: f32[16,128], index: 2, kind: input, shape index: {}]   ;;  %s923_s3 = inlined_call_operand.vmem [shape: f32[16,128], index: 3, kind: input, shape index: {}]   ;;  %s924_s4 = inlined_call_operand.vmem [shape: f32[1,8,128], index: 4, kind: output, shape index: {0}]   ;;  %s925_s5 = inlined_call_operand.vmem [shape: f32[1,8,128], index: 5, kind: output, shape index: {1}]  }
   0x1   :  { %s847_s20 = smov 0  }
   0x2 LB: > { %s25_s21 = sadd.s32 1, %s806_s19  ;;  %p723_p0 = scmp.ge.s32.totalorder %s810_s20, 1  ;;  %s810_s20 = sphi %s847_s20, %s16_s20   ;;  %s806_s19 = sphi %s845_s19, %s927_s19   ;;  %s802_s18 = sphi %s843_s18, %s926_s18  }
   0x3   : > { %p26_p1 = scmp.ge.s32.totalorder %s25_s21, 3  ;;  %p343_p2 = scmp.lt.s32.totalorder %s810_s20, 4 }
   0x5   : > { %s929_s21 = smov (%p26_p1, %s25_s21), 0  ;;  %p344_p3 = pnand %p723_p0, %p343_p2 }
   0x6   : > { %p753_p4 = scmp.ne.s32.totalorder (!%p344_p3), %s802_s18, 0 }
   0x7   : > { %347 = sbr.rel (%p344_p3) target bundleno = 83 (0x53), region = 36 }
   0xc   : > { %505 = sbr.rel (%p753_p4) target bundleno = 20 (0x14), region = 40 }
  0x11   : > { %v812_v0 = vmov 0.0  }
  0x12   : > { %506 = vst [vmem:[%s924_s4] sm:$0xff] %v812_v0 }
  0x13   : > { %507 = vst [vmem:[%s925_s5] sm:$0xff] %v812_v0 }
  0x14 PF: > { %p508_p5 = scmp.ge.s32.totalorder %s802_s18, 0  ;;  %p509_p6 = scmp.le.s32.totalorder %s802_s18, 0 }
  0x16   : > { %p510_p7 = pnand %p509_p6, %p508_p5 }
  0x18   : > { %513 = sbr.rel (%p510_p7) target bundleno = 42 (0x2a), region = 44 }
  0x1d   : > { %v515_v1 = vld [vmem:[%s920_s0] sm:$0xff] }
  0x1e   : > { %784 = vlog2.f32 %v515_v1  ;;  %v514_v3 = vld [vmem:[%s924_s4] sm:$0xff] }
  0x24   : > { %v785_v2 = vpop.eup %784 }
  0x25   : > { %v517_v4 = vmul.f32 0.6931472, %v785_v2 }
  0x27   : > { %v519_v5 = vadd.f32 %v517_v4, %v514_v3 }
  0x29   : > { %520 = vst [vmem:[%s924_s4] sm:$0xff] %v519_v5 }
  0x2a PF: > { %p754_p8 = scmp.ne.s32.totalorder %s802_s18, 1 }
  0x2c   : > { %524 = sbr.rel (%p754_p8) target bundleno = 63 (0x3f), region = 48 }
  0x31   : > { %v526_v6 = vld [vmem:[%s921_s1] sm:$0xff]  ;;  %v529_v7 = vlaneseq }
  0x32   : > { %786 = vlog2.f32 %v526_v6  ;;  %v525_v10 = vld [vmem:[%s924_s4] sm:$0xff] }
  0x33   : > { %v530_v8 = vshrl.u32 %v529_v7, 7 }
  0x35   : > { %vm531_vm0 = vcmp.lt.s32.totalorder %v530_v8, 1 }
  0x38   : > { %v787_v9 = vpop.eup %786 }
  0x39   : > { %v528_v11 = vmul.f32 0.6931472, %v787_v9 }
  0x3b   : > { %v532_v12 = vsel %vm531_vm0, %v528_v11, 0.0 }
  0x3c   : > { %v534_v13 = vadd.f32 %v532_v12, %v525_v10 }
  0x3e   : > { %535 = vst [vmem:[%s924_s4] sm:$0xff] %v534_v13 }
  0x3f PF: > { %p536_p9 = scmp.ge.s32.totalorder %s802_s18, 2  ;;  %p537_p10 = scmp.le.s32.totalorder %s802_s18, 2 }
  0x41   : > { %p538_p11 = pnand %p537_p10, %p536_p9 }
  0x43   : > { %541 = sbr.rel (%p538_p11) target bundleno = 83 (0x53), region = 52 }
  0x48   : > { %v543_v14 = vld [vmem:[%s922_s2] sm:$0xff]  ;;  %v544_v15 = vld [vmem:[%s922_s2 + $0x8] sm:$0xff] }
  0x49   : > { %v545_v16 = vld [vmem:[%s923_s3] sm:$0xff]  ;;  %v546_v17 = vld [vmem:[%s923_s3 + $0x8] sm:$0xff] }
  0x4a   : > { %v547_v18 = vsub.f32 %v543_v14, %v545_v16  ;;  %v548_v19 = vsub.f32 %v544_v15, %v546_v17  ;;  %v542_v22 = vld [vmem:[%s925_s5] sm:$0xff] }
  0x4c   : > { %v549_v20 = vmul.f32 %v547_v18, %v547_v18  ;;  %v550_v21 = vmul.f32 %v548_v19, %v548_v19 }
  0x4e   : > { %v551_v23 = vadd.f32 %v550_v21, %v549_v20 }
  0x50   : > { %v552_v24 = vadd.f32 %v551_v23, %v542_v22 }
  0x52   : > { %553 = vst [vmem:[%s925_s5] sm:$0xff] %v552_v24 }
  0x53 PF: > { %s16_s20 = sadd.s32 1, %s810_s20   ;;  %s926_s18 = smov %s806_s19 }
  0x54   : > { %p13_p12 = scmp.ge.s32.totalorder %s16_s20, 5   ;;  %s927_s19 = smov %s929_s21 }
  0x56   :  { %15 = sbr.rel (!%p13_p12) target bundleno = 2 (0x2), region = 103 }

</bundles_post_ra>
